<compile_context>
chip_gen: v5e
topology: v5e:2x2
jax: 0.10.0
libtpu: 0.0.40
codegen_flags: <defaults>
</compile_context>

<pallas_src>
import functools

import jax
import jax.numpy as jnp
from jax.experimental import pallas as pl
from jax.experimental.pallas import tpu as pltpu


def _round_up(x, m):
    return (x + m - 1) // m * m


def _gau_cnn_kernel(x_ref, w0_ref, wgru_ref, wfc_ref, bias_ref, out_ref, *,
                    n_hidden):
    H4 = 4 * n_hidden
    wdt = w0_ref.dtype  # matmul input dtype (bf16 or f32); accumulation is f32

    # Packed f32 bias row: [b0 (4H) | b_gru (4*4H) | b_fc (n_out_pad)].
    b0 = bias_ref[:, 0 * H4:1 * H4]
    b_gru = bias_ref[:, 1 * H4:5 * H4]
    b_fc = bias_ref[:, 5 * H4:]

    # Input Linear + all 4 conv1d(k=1)+BN(eval) branches, folded into ONE matmul
    # (exact: there is no nonlinearity between the Linear and the convs).
    c = jnp.dot(x_ref[...].astype(wdt), w0_ref[...],
                preferred_element_type=jnp.float32) + b0
    c = jnp.maximum(c, 0.0)  # ReLU; branch b lives in lanes [b*H, (b+1)*H)

    # All 4 GRUCells (input == hidden == c) in one matmul over the pre-summed,
    # block-diagonal, gate-major weight: [W_r_sum | W_z_sum | W_ih_n | W_hh_n].
    g = jnp.dot(c.astype(wdt), wgru_ref[...],
                preferred_element_type=jnp.float32) + b_gru
    r = jax.nn.sigmoid(g[:, 0 * H4:1 * H4])
    z = jax.nn.sigmoid(g[:, 1 * H4:2 * H4])
    n = jnp.tanh(g[:, 2 * H4:3 * H4] + r * g[:, 3 * H4:4 * H4])
    hp = (1.0 - z) * n + z * c  # (TB, 4H), already in concat(branch0..3) order

    # max_pool1d over a length-1 axis == identity; dropout == identity (eval).
    out = jnp.dot(hp.astype(wdt), wfc_ref[...],
                  preferred_element_type=jnp.float32) + b_fc
    out_ref[...] = out.astype(out_ref.dtype)


def pack_params(p, *, n_hidden, weight_dtype=jnp.bfloat16):
    """Fuse parameters into lane-dense, gate-aligned kernel arrays (f32 math)."""
    H = n_hidden
    nB = 4
    H4 = nB * H
    n_out = p["w_fc"].shape[1]
    n_out_pad = _round_up(n_out, 128)
    f32 = jnp.float32
    hi = jax.lax.Precision.HIGHEST

    # conv+BN(eval) fold: (4, d_model, H) -> (d_model, 4H).
    w_conv = jnp.concatenate([p["w_conv_eff"][b] for b in range(nB)],
                             axis=1).astype(f32)
    b_conv = jnp.concatenate([p["b_conv_eff"][b] for b in range(nB)],
                             axis=1).astype(f32)

    # Fold the input Linear into the conv weights (exact; no activation between).
    w0 = jnp.dot(p["w_lin"].astype(f32), w_conv, precision=hi)        # (n_in, 4H)
    b0 = jnp.dot(p["b_lin"].astype(f32), w_conv, precision=hi) + b_conv

    # GRU: block-diagonal across branches, gate-major columns; r/z weights and
    # biases pre-summed (input == hidden in this model).
    def _blk(getter):  # per-branch (H, H) blocks -> block-diagonal (4H, 4H)
        out = jnp.zeros((H4, H4), dtype=f32)
        for b in range(nB):
            out = out.at[b * H:(b + 1) * H, b * H:(b + 1) * H].set(
                getter(b).astype(f32))
        return out

    w_ih, w_hh = p["w_ih"], p["w_hh"]
    w_r = _blk(lambda b: w_ih[b, :, 0 * H:1 * H] + w_hh[b, :, 0 * H:1 * H])
    w_z = _blk(lambda b: w_ih[b, :, 1 * H:2 * H] + w_hh[b, :, 1 * H:2 * H])
    w_in = _blk(lambda b: w_ih[b, :, 2 * H:3 * H])
    w_hn = _blk(lambda b: w_hh[b, :, 2 * H:3 * H])
    w_gru = jnp.concatenate([w_r, w_z, w_in, w_hn], axis=1)          # (4H, 4*4H)

    def _bias_blk(getter):  # per-branch (1, H) -> (1, 4H)
        return jnp.concatenate([getter(b).astype(f32) for b in range(nB)], axis=1)

    b_ih, b_hh = p["b_ih"], p["b_hh"]
    b_r = _bias_blk(lambda b: b_ih[b, :, 0 * H:1 * H] + b_hh[b, :, 0 * H:1 * H])
    b_z = _bias_blk(lambda b: b_ih[b, :, 1 * H:2 * H] + b_hh[b, :, 1 * H:2 * H])
    b_in = _bias_blk(lambda b: b_ih[b, :, 2 * H:3 * H])
    b_hn = _bias_blk(lambda b: b_hh[b, :, 2 * H:3 * H])
    b_gru = jnp.concatenate([b_r, b_z, b_in, b_hn], axis=1)          # (1, 4*4H)

    # Final linear padded to a lane-dense (multiple of 128) output width.
    w_fc = jnp.pad(p["w_fc"].astype(f32), ((0, 0), (0, n_out_pad - n_out)))
    b_fc = jnp.pad(p["b_fc"].astype(f32), ((0, 0), (0, n_out_pad - n_out)))

    # All biases packed into one f32 row (fewer operands / DMA descriptors).
    bias = jnp.concatenate([b0, b_gru, b_fc], axis=1)      # (1, 5*4H + n_out_pad)

    wd = weight_dtype
    return {
        "w0": w0.astype(wd), "w_gru": w_gru.astype(wd), "w_fc": w_fc.astype(wd),
        "bias": bias, "n_out": n_out, "n_out_pad": n_out_pad,
    }


def gau_cnn_forward(x, kp, *, n_hidden, batch_tile=512, out_dtype=jnp.float32):
    B, n_in = x.shape
    H4 = 4 * n_hidden
    n_out = kp["n_out"]
    n_out_pad = kp["n_out_pad"]
    wdt = kp["w0"].dtype

    # Batch tiling: big tiles fill the MXU M dim and amortize per-step overhead;
    # when more than one tile is needed, use an even tile count (v7x megacore).
    Bp8 = _round_up(B, 8)
    if Bp8 <= batch_tile:
        TB = Bp8                                     # single step, full batch
    else:
        n_tiles = -(-Bp8 // batch_tile)              # ceil
        if n_tiles % 2:
            n_tiles += 1                             # even grid length
        TB = _round_up(-(-Bp8 // n_tiles), 16)
    Bp = _round_up(B, TB)
    grid = (Bp // TB,)

    xp = jnp.pad(x, ((0, Bp - B), (0, 0))) if Bp != B else x
    xp = xp.astype(wdt)   # pre-cast: halves input DMA, removes in-kernel cast

    weights = (kp["w0"], kp["w_gru"], kp["w_fc"], kp["bias"])

    def _resident(arr):   # constant block index across the grid -> VMEM-resident
        return pl.BlockSpec(arr.shape, lambda i, _nd=arr.ndim: (0,) * _nd)

    in_specs = ([pl.BlockSpec((TB, n_in), lambda i: (i, 0))]
                + [_resident(w) for w in weights])
    out_spec = pl.BlockSpec((TB, n_out_pad), lambda i: (i, 0))

    flops = 2 * Bp * (n_in * H4 + H4 * 4 * H4 + H4 * n_out_pad)
    transcendentals = Bp * 3 * H4  # 2x sigmoid + 1x tanh per hidden lane
    bytes_accessed = (int(xp.size) * xp.dtype.itemsize
                      + sum(int(w.size) * w.dtype.itemsize for w in weights)
                      + Bp * n_out_pad * jnp.dtype(out_dtype).itemsize)

    out_padded = pl.pallas_call(
        functools.partial(_gau_cnn_kernel, n_hidden=n_hidden),
        out_shape=jax.ShapeDtypeStruct((Bp, n_out_pad), out_dtype),
        grid=grid,
        in_specs=in_specs,
        out_specs=out_spec,
        compiler_params=pltpu.CompilerParams(
            dimension_semantics=("parallel",),
            vmem_limit_bytes=32 * 1024 * 1024),
        cost_estimate=pl.CostEstimate(flops=flops,
                                      transcendentals=transcendentals,
                                      bytes_accessed=bytes_accessed),
    )(xp, *weights)

    # TODO(synk): return out_padded directly if the consumer tolerates padding;
    # this slice is an extra HBM read/write of the whole buffer in XLA.
    return out_padded[:B, :n_out]


def make_params(key, n_inputs, d_model, n_hidden, n_out):
    """Deterministic synthetic parameters (weights pre-transposed to (in, out))."""
    ks = jax.random.split(key, 32)
    it = iter(range(32))

    def rnd(shape, scale=0.1):
        return scale * jax.random.normal(ks[next(it)], shape, dtype=jnp.float32)

    p = {}
    p["w_lin"] = rnd((n_inputs, d_model))
    p["b_lin"] = rnd((1, d_model))

    # Per-branch conv1d(k=1) weights (d_model, H) + bias, BN eval params folded.
    w_conv = rnd((4, d_model, n_hidden))
    b_conv = rnd((4, 1, n_hidden))
    bn_gamma = 1.0 + rnd((4, 1, n_hidden))
    bn_beta = rnd((4, 1, n_hidden))
    bn_rmean = rnd((4, 1, n_hidden))
    bn_rvar = jnp.abs(1.0 + rnd((4, 1, n_hidden)))
    eps = 1e-5
    scale = bn_gamma / jnp.sqrt(bn_rvar + eps)                    # (4, 1, H)
    p["w_conv_eff"] = w_conv * scale
    p["b_conv_eff"] = (b_conv - bn_rmean) * scale + bn_beta

    # GRUCell params, PyTorch (r, z, n) gate order, transposed to (H, 3H).
    p["w_ih"] = rnd((4, n_hidden, 3 * n_hidden))
    p["b_ih"] = rnd((4, 1, 3 * n_hidden))
    p["w_hh"] = rnd((4, n_hidden, 3 * n_hidden))
    p["b_hh"] = rnd((4, 1, 3 * n_hidden))

    p["w_fc"] = rnd((4 * n_hidden, n_out))
    p["b_fc"] = rnd((1, n_out))
    return p


def reference_forward(x, p, n_hidden):
    """Pure-JAX reference (unfused, f32, highest precision) for correctness."""
    H = n_hidden
    hi = jax.lax.Precision.HIGHEST
    h = jnp.dot(x, p["w_lin"], precision=hi) + p["b_lin"]
    outs = []
    for i in range(4):
        c = jnp.maximum(jnp.dot(h, p["w_conv_eff"][i], precision=hi)
                        + p["b_conv_eff"][i], 0.0)
        gi = jnp.dot(c, p["w_ih"][i], precision=hi) + p["b_ih"][i]
        gh = jnp.dot(c, p["w_hh"][i], precision=hi) + p["b_hh"][i]
        r = jax.nn.sigmoid(gi[:, :H] + gh[:, :H])
        z = jax.nn.sigmoid(gi[:, H:2 * H] + gh[:, H:2 * H])
        n = jnp.tanh(gi[:, 2 * H:] + r * gh[:, 2 * H:])
        outs.append((1.0 - z) * n + z * c)
    cat = jnp.concatenate(outs, axis=-1)
    return jnp.dot(cat, p["w_fc"], precision=hi) + p["b_fc"]


if __name__ == "__main__":
    n_inputs, d_model, n_hidden, n_out = 16, 32, 32, 8
    batch = 8

    key = jax.random.PRNGKey(0)
    k_x, k_p = jax.random.split(key)
    x = jax.random.normal(k_x, (batch, n_inputs), dtype=jnp.float32)
    params = make_params(k_p, n_inputs, d_model, n_hidden, n_out)
    ref = reference_forward(x, params, n_hidden)

    # f32 weights / f32 output: tight check against the pure-JAX reference.
    kp_f32 = pack_params(params, n_hidden=n_hidden, weight_dtype=jnp.float32)
    out_f32 = jax.block_until_ready(gau_cnn_forward(x, kp_f32, n_hidden=n_hidden))
    assert out_f32.shape == (batch, n_out)
    assert jnp.allclose(out_f32, ref, atol=1e-4, rtol=1e-4), "f32 mismatch vs ref"

    # Default path: bf16 weights/activations (MXU-native) + bf16 output.
    kp_bf16 = pack_params(params, n_hidden=n_hidden)  # weight_dtype=bf16 default
    out_bf16 = jax.block_until_ready(
        gau_cnn_forward(x, kp_bf16, n_hidden=n_hidden, out_dtype=jnp.bfloat16))
    assert out_bf16.shape == (batch, n_out)
    assert jnp.allclose(out_bf16.astype(jnp.float32), ref,
                        atol=5e-2, rtol=5e-2), "bf16 mismatch vs ref"

    print("KERNEL_OK")
</pallas_src>

<mosaic_0001>
module attributes {stable_mosaic.version = 11 : i64} {
  func.func @_gau_cnn_kernel(%arg0: i32, %arg1: memref<8x16xf32, #tpu.memory_space<vmem>>, %arg2: memref<16x128xf32, #tpu.memory_space<vmem>>, %arg3: memref<128x512xf32, #tpu.memory_space<vmem>>, %arg4: memref<128x128xf32, #tpu.memory_space<vmem>>, %arg5: memref<1x768xf32, #tpu.memory_space<vmem>>, %arg6: memref<8x128xf32, #tpu.memory_space<vmem>>) attributes {dimension_semantics = [#tpu.dimension_semantics<parallel>], iteration_bounds = array<i64: 1>, scalar_prefetch = 0 : i64, scratch_operands = 0 : i64, tpu.core_type = #tpu.core_type<tc>, window_params = [{transform_indices = @transform_0, window_bounds = array<i64: 8, 16>}, {pipeline_mode = #tpu.pipeline_mode<synchronous>, transform_indices = @transform_1, window_bounds = array<i64: 16, 128>}, {pipeline_mode = #tpu.pipeline_mode<synchronous>, transform_indices = @transform_2, window_bounds = array<i64: 128, 512>}, {pipeline_mode = #tpu.pipeline_mode<synchronous>, transform_indices = @transform_3, window_bounds = array<i64: 128, 128>}, {pipeline_mode = #tpu.pipeline_mode<synchronous>, transform_indices = @transform_4, window_bounds = array<i64: 1, 768>}, {transform_indices = @transform_5, window_bounds = array<i64: 8, 128>}]} {
    %c0 = arith.constant 0 : index
    %c0_0 = arith.constant 0 : index
    %0 = vector.load %arg5[%c0, %c0_0] : memref<1x768xf32, #tpu.memory_space<vmem>>, vector<1x128xf32>
    %c0_1 = arith.constant 0 : index
    %c128 = arith.constant 128 : index
    %1 = vector.load %arg5[%c0_1, %c128] : memref<1x768xf32, #tpu.memory_space<vmem>>, vector<1x512xf32>
    %c0_2 = arith.constant 0 : index
    %c640 = arith.constant 640 : index
    %2 = vector.load %arg5[%c0_2, %c640] : memref<1x768xf32, #tpu.memory_space<vmem>>, vector<1x128xf32>
    %c0_3 = arith.constant 0 : index
    %c0_4 = arith.constant 0 : index
    %3 = vector.load %arg1[%c0_3, %c0_4] : memref<8x16xf32, #tpu.memory_space<vmem>>, vector<8x16xf32>
    %c0_5 = arith.constant 0 : index
    %c0_6 = arith.constant 0 : index
    %4 = vector.load %arg2[%c0_5, %c0_6] : memref<16x128xf32, #tpu.memory_space<vmem>>, vector<16x128xf32>
    %cst = arith.constant dense<0.000000e+00> : vector<8x128xf32>
    %5 = tpu.matmul %3, %4, %cst {dimension_numbers = #tpu.dot_dimension_numbers<[1], [0], [0], [1], [0, 0, 1, 1], [], []>} : vector<8x16xf32>, vector<16x128xf32>, vector<8x128xf32> -> vector<8x128xf32>
    %6 = vector.broadcast %0 : vector<1x128xf32> to vector<8x128xf32>
    %7 = arith.addf %5, %6 : vector<8x128xf32>
    %cst_7 = arith.constant 0.000000e+00 : f32
    %8 = vector.broadcast %cst_7 : f32 to vector<8x128xf32>
    %9 = arith.maximumf %7, %8 : vector<8x128xf32>
    %c0_8 = arith.constant 0 : index
    %c0_9 = arith.constant 0 : index
    %10 = vector.load %arg3[%c0_8, %c0_9] : memref<128x512xf32, #tpu.memory_space<vmem>>, vector<128x512xf32>
    %cst_10 = arith.constant dense<0.000000e+00> : vector<8x512xf32>
    %11 = tpu.matmul %9, %10, %cst_10 {dimension_numbers = #tpu.dot_dimension_numbers<[1], [0], [0], [1], [0, 0, 1, 1], [], []>} : vector<8x128xf32>, vector<128x512xf32>, vector<8x512xf32> -> vector<8x512xf32>
    %12 = vector.broadcast %1 : vector<1x512xf32> to vector<8x512xf32>
    %13 = arith.addf %11, %12 : vector<8x512xf32>
    %14 = vector.extract_strided_slice %13 {offsets = [0, 0], sizes = [8, 128], strides = [1, 1]} : vector<8x512xf32> to vector<8x128xf32>
    %15 = arith.negf %14 : vector<8x128xf32>
    %16 = math.exp %15 : vector<8x128xf32>
    %cst_11 = arith.constant 1.000000e+00 : f32
    %17 = vector.broadcast %cst_11 : f32 to vector<8x128xf32>
    %18 = arith.addf %17, %16 : vector<8x128xf32>
    %19 = arith.divf %17, %18 : vector<8x128xf32>
    %20 = vector.extract_strided_slice %13 {offsets = [0, 128], sizes = [8, 128], strides = [1, 1]} : vector<8x512xf32> to vector<8x128xf32>
    %21 = arith.negf %20 : vector<8x128xf32>
    %22 = math.exp %21 : vector<8x128xf32>
    %cst_12 = arith.constant 1.000000e+00 : f32
    %23 = vector.broadcast %cst_12 : f32 to vector<8x128xf32>
    %24 = arith.addf %23, %22 : vector<8x128xf32>
    %25 = arith.divf %23, %24 : vector<8x128xf32>
    %26 = vector.extract_strided_slice %13 {offsets = [0, 256], sizes = [8, 128], strides = [1, 1]} : vector<8x512xf32> to vector<8x128xf32>
    %27 = vector.extract_strided_slice %13 {offsets = [0, 384], sizes = [8, 128], strides = [1, 1]} : vector<8x512xf32> to vector<8x128xf32>
    %28 = arith.mulf %19, %27 : vector<8x128xf32>
    %29 = arith.addf %26, %28 : vector<8x128xf32>
    %30 = math.tanh %29 : vector<8x128xf32>
    %cst_13 = arith.constant 1.000000e+00 : f32
    %31 = vector.broadcast %cst_13 : f32 to vector<8x128xf32>
    %32 = arith.subf %31, %25 : vector<8x128xf32>
    %33 = arith.mulf %32, %30 : vector<8x128xf32>
    %34 = arith.mulf %25, %9 : vector<8x128xf32>
    %35 = arith.addf %33, %34 : vector<8x128xf32>
    %c0_14 = arith.constant 0 : index
    %c0_15 = arith.constant 0 : index
    %36 = vector.load %arg4[%c0_14, %c0_15] : memref<128x128xf32, #tpu.memory_space<vmem>>, vector<128x128xf32>
    %cst_16 = arith.constant dense<0.000000e+00> : vector<8x128xf32>
    %37 = tpu.matmul %35, %36, %cst_16 {dimension_numbers = #tpu.dot_dimension_numbers<[1], [0], [0], [1], [0, 0, 1, 1], [], []>} : vector<8x128xf32>, vector<128x128xf32>, vector<8x128xf32> -> vector<8x128xf32>
    %38 = vector.broadcast %2 : vector<1x128xf32> to vector<8x128xf32>
    %39 = arith.addf %37, %38 : vector<8x128xf32>
    %c0_17 = arith.constant 0 : index
    %c0_18 = arith.constant 0 : index
    %40 = vector.load %arg6[%c0_17, %c0_18] : memref<8x128xf32, #tpu.memory_space<vmem>>, vector<8x128xf32>
    tpu.vector_store %arg6[%c0_17, %c0_18], %39 {strides = array<i32>} : memref<8x128xf32, #tpu.memory_space<vmem>>, vector<8x128xf32>,
    return
  }
  func.func @transform_0(%arg0: i32) -> (i32, i32) {
    %c0_i32 = arith.constant 0 : i32
    %c0_i32_0 = arith.constant 0 : i32
    return %arg0, %c0_i32 : i32, i32
  }
  func.func @transform_1(%arg0: i32) -> (i32, i32) {
    %c0_i32 = arith.constant 0 : i32
    %c0_i32_0 = arith.constant 0 : i32
    %c0_i32_1 = arith.constant 0 : i32
    return %c0_i32, %c0_i32_0 : i32, i32
  }
  func.func @transform_2(%arg0: i32) -> (i32, i32) {
    %c0_i32 = arith.constant 0 : i32
    %c0_i32_0 = arith.constant 0 : i32
    %c0_i32_1 = arith.constant 0 : i32
    return %c0_i32, %c0_i32_0 : i32, i32
  }
  func.func @transform_3(%arg0: i32) -> (i32, i32) {
    %c0_i32 = arith.constant 0 : i32
    %c0_i32_0 = arith.constant 0 : i32
    %c0_i32_1 = arith.constant 0 : i32
    return %c0_i32, %c0_i32_0 : i32, i32
  }
  func.func @transform_4(%arg0: i32) -> (i32, i32) {
    %c0_i32 = arith.constant 0 : i32
    %c0_i32_0 = arith.constant 0 : i32
    %c0_i32_1 = arith.constant 0 : i32
    return %c0_i32, %c0_i32_0 : i32, i32
  }
  func.func @transform_5(%arg0: i32) -> (i32, i32) {
    %c0_i32 = arith.constant 0 : i32
    %c0_i32_0 = arith.constant 0 : i32
    return %arg0, %c0_i32 : i32, i32
  }
}

</mosaic_0001>

<bundles_post_ra>
// kernel: tpu_custom_call.1
= control target key start
LH: loop header
LB: loop body
LE: loop exit
PB: predicated region body
PF: predicated region fallthrough
CT: control target
= control target key end

     0   :  { %10 = vsyncpa [#allocation3], 0  ;;  %s628_s0 = inlined_call_operand.hbm [shape: f32[8,16], index: 0, kind: input, shape index: {}]   ;;  %s629_s1 = inlined_call_operand.hbm [shape: f32[16,128], index: 1, kind: input, shape index: {}]   ;;  %s630_s2 = inlined_call_operand.hbm [shape: f32[128,512], index: 2, kind: input, shape index: {}]   ;;  %s631_s3 = inlined_call_operand.hbm [shape: f32[128,128], index: 3, kind: input, shape index: {}]   ;;  %s632_s4 = inlined_call_operand.hbm [shape: f32[1,768], index: 4, kind: input, shape index: {}]   ;;  %s633_s5 = inlined_call_operand.hbm [shape: f32[8,128], index: 5, kind: output, shape index: {}]  }
   0x1   :  { %11 = vsyncpa [#allocation6], 0 }
   0x2   :  { %12 = vsyncpa [#allocation9], 0  ;;  %s29_s20 = sshll.u32 %s629_s1, 4  ;;  %s30_s20 = int_to_ptr.hbm [resolvable:$true] %s29_s20 }
   0x3   :  { %13 = vsyncpa [#allocation4], 0  ;;  %s563_s21 = smov [#allocation5]   ;;  %s55_s25 = sshll.u32 %s631_s3, 4  ;;  %s56_s25 = int_to_ptr.hbm [resolvable:$true] %s55_s25 }
   0x4   :  { %s31_s22 = sshll.u32 %s563_s21, 4  ;;  %s564_s26 = smov 128   ;;  %s32_s22 = int_to_ptr.vmem [resolvable:$true] %s31_s22 }
   0x5   :  { %s565_s27 = smov 8   ;;  %s566_s28 = smov [#allocation8]  }
   0x6   :  { %37 = dma.hbm_to_vmem [thread:$0]  %s30_s20, 256, %s32_s22, [#allocation6], %s564_s26, %s564_s26, %s565_s27  }
   0x7   :  { %s57_s29 = sshll.u32 %s566_s28, 4  ;;  %s19_s7 = sshll.u32 %s628_s0, 4  ;;  %s58_s29 = int_to_ptr.vmem [resolvable:$true] %s57_s29  ;;  %s20_s7 = int_to_ptr.hbm [resolvable:$true] %s19_s7 }
   0x8   :  { %63 = dma.hbm_to_vmem [thread:$0]  %s56_s25, 2048, %s58_s29, [#allocation9], %s564_s26, %s564_s26, %s565_s27  }
   0x9   :  { %s42_s9 = sshll.u32 %s630_s2, 4  ;;  %s567_s10 = smov [#allocation2]   ;;  %s43_s9 = int_to_ptr.hbm [resolvable:$true] %s42_s9 }
   0xa   :  { %s21_s11 = sshll.u32 %s567_s10, 4  ;;  %s568_s3 = smov [#allocation7]   ;;  %s22_s11 = int_to_ptr.vmem [resolvable:$true] %s21_s11 }
   0xb   :  { %24 = dma.hbm_to_vmem [thread:$0]  %s20_s7, 128, %s22_s11, [#allocation3]  }
   0xc   :  { %s44_s12 = sshll.u32 %s568_s3, 4  ;;  %s569_s13 = smov 512   ;;  %s45_s12 = int_to_ptr.vmem [resolvable:$true] %s44_s12 }
   0xd   :  { %s570_s14 = smov 32   ;;  %s69_s16 = sshll.u32 %s632_s4, 4  ;;  %s70_s16 = int_to_ptr.hbm [resolvable:$true] %s69_s16 }
   0xe   :  { %50 = dma.hbm_to_vmem [thread:$0]  %s43_s9, 8192, %s45_s12, [#allocation6], %s569_s13, %s569_s13, %s570_s14  }
   0xf   :  { %s571_s17 = smov [#allocation10]  }
  0x10   :  { %s71_s18 = sshll.u32 %s571_s17, 4  ;;  %s72_s18 = int_to_ptr.vmem [resolvable:$true] %s71_s18 }
  0x11   :  { %74 = dma.hbm_to_vmem [thread:$0]  %s70_s16, 96, %s72_s18, [#allocation9]  }
  0x12   :  { %555 = dma.done.wait [#allocation3], 128  }
  0x13   :  { %556 = vsyncadd [#allocation3], 4294967168 }
  0x14   :  { %557 = dma.done.wait [#allocation6], 8448  }
  0x15   :  { %558 = vsyncadd [#allocation6], 4294958848 }
  0x16   :  { %559 = dma.done.wait [#allocation9], 2144  }
  0x17   :  { %560 = vsyncadd [#allocation9], 4294965152  ;;  %v100_v0 = vld [vmem:[#allocation5 + $0x8] sm:$0xff]  ;;  %v99_v1 = vld [vmem:[#allocation5] sm:$0xff]  ;;  %vm104_vm0 = vcmask 130048   ;;  %s572_s2 = smov [#allocation11]  }
  0x18   :  { %v98_v2 = vld [vmem:[#allocation2] sm:$0xff]  ;;  %122 = vmatpush.msra.mxu0 %v100_v0  ;;  %v189_v3 = vld [vmem:[#allocation7 + $0x1e0] sm:$0xff]  ;;  %v191_v5 = vld [vmem:[#allocation7 + $0x1f0] sm:$0xff]  ;;  %s372_s4 = sshll.u32 %s572_s2, 4  ;;  %s374_s21 = sshll.u32 %s633_s5, 4  ;;  %s373_s4 = int_to_ptr.vmem [resolvable:$true] %s372_s4  ;;  %s375_s21 = int_to_ptr.hbm [resolvable:$true] %s374_s21 }
  0x19   :  { %v190_v4 = vld [vmem:[#allocation7 + $0x1e8] sm:$0xff]  ;;  %202 = vmatpush.msra.mxu1 %v189_v3  ;;  %v192_v6 = vld [vmem:[#allocation7 + $0x1f8] sm:$0xff]  ;;  %v185_v7 = vld [vmem:[#allocation7 + $0x1c0] sm:$0xff]  ;;  %242 = vmatpush.msra.mxu3 %v191_v5 }
  0x1a   :  { %222 = vmatpush.msra.mxu2 %v190_v4  ;;  %v186_v8 = vld [vmem:[#allocation7 + $0x1c8] sm:$0xff]  ;;  %123 = vmatpush.msra.mxu0 %v99_v1  ;;  %v187_v9 = vld [vmem:[#allocation7 + $0x1d0] sm:$0xff]  ;;  %v181_v10 = vld [vmem:[#allocation7 + $0x1a0] sm:$0xff] }
  0x1b   :  { %386 = vmatmul.msk.f32.vlgmr.msra.gmra.mxu0 %vm104_vm0, %v98_v2  ;;  %203 = vmatpush.msra.mxu1 %v185_v7  ;;  %v188_v11 = vld [vmem:[#allocation7 + $0x1d8] sm:$0xff]  ;;  %v182_v12 = vld [vmem:[#allocation7 + $0x1a8] sm:$0xff]  ;;  %v183_v13 = vld [vmem:[#allocation7 + $0x1b0] sm:$0xff] }
  0x1c   :  { %262 = vmatpush.msrb.mxu0 %v192_v6  ;;  %223 = vmatpush.msra.mxu2 %v186_v8  ;;  %v177_v14 = vld [vmem:[#allocation7 + $0x180] sm:$0xff]  ;;  %v184_v15 = vld [vmem:[#allocation7 + $0x1b8] sm:$0xff]  ;;  %v178_v16 = vld [vmem:[#allocation7 + $0x188] sm:$0xff] }
  0x1d   :  { %243 = vmatpush.msra.mxu3 %v187_v9  ;;  %204 = vmatpush.msra.mxu1 %v181_v10  ;;  %v179_v17 = vld [vmem:[#allocation7 + $0x190] sm:$0xff]  ;;  %v173_v18 = vld [vmem:[#allocation7 + $0x160] sm:$0xff]  ;;  %v180_v19 = vld [vmem:[#allocation7 + $0x198] sm:$0xff] }
  0x1e   :  { %263 = vmatpush.msrb.mxu0 %v188_v11  ;;  %224 = vmatpush.msra.mxu2 %v182_v12  ;;  %v174_v20 = vld [vmem:[#allocation7 + $0x168] sm:$0xff]  ;;  %v175_v21 = vld [vmem:[#allocation7 + $0x170] sm:$0xff]  ;;  %v169_v22 = vld [vmem:[#allocation7 + $0x140] sm:$0xff] }
  0x1f   :  { %244 = vmatpush.msra.mxu3 %v183_v13  ;;  %205 = vmatpush.msra.mxu1 %v177_v14  ;;  %v176_v23 = vld [vmem:[#allocation7 + $0x178] sm:$0xff]  ;;  %v170_v24 = vld [vmem:[#allocation7 + $0x148] sm:$0xff]  ;;  %v171_v25 = vld [vmem:[#allocation7 + $0x150] sm:$0xff] }
  0x20   :  { %264 = vmatpush.msrb.mxu0 %v184_v15  ;;  %225 = vmatpush.msra.mxu2 %v178_v16  ;;  %v165_v26 = vld [vmem:[#allocation7 + $0x120] sm:$0xff]  ;;  %v172_v27 = vld [vmem:[#allocation7 + $0x158] sm:$0xff]  ;;  %v166_v28 = vld [vmem:[#allocation7 + $0x128] sm:$0xff] }
  0x21   :  { %245 = vmatpush.msra.mxu3 %v179_v17  ;;  %206 = vmatpush.msra.mxu1 %v173_v18  ;;  %v167_v29 = vld [vmem:[#allocation7 + $0x130] sm:$0xff]  ;;  %v161_v30 = vld [vmem:[#allocation7 + $0x100] sm:$0xff]  ;;  %v168_v31 = vld [vmem:[#allocation7 + $0x138] sm:$0xff] }
  0x22   :  { %265 = vmatpush.msrb.mxu0 %v180_v19  ;;  %226 = vmatpush.msra.mxu2 %v174_v20  ;;  %v162_v32 = vld [vmem:[#allocation7 + $0x108] sm:$0xff]  ;;  %v163_v33 = vld [vmem:[#allocation7 + $0x110] sm:$0xff]  ;;  %v157_v34 = vld [vmem:[#allocation7 + $0xe0] sm:$0xff] }
  0x23   :  { %246 = vmatpush.msra.mxu3 %v175_v21  ;;  %207 = vmatpush.msra.mxu1 %v169_v22  ;;  %v164_v35 = vld [vmem:[#allocation7 + $0x118] sm:$0xff]  ;;  %v158_v36 = vld [vmem:[#allocation7 + $0xe8] sm:$0xff]  ;;  %v159_v37 = vld [vmem:[#allocation7 + $0xf0] sm:$0xff] }
  0x24   :  { %266 = vmatpush.msrb.mxu0 %v176_v23  ;;  %227 = vmatpush.msra.mxu2 %v170_v24  ;;  %v153_v38 = vld [vmem:[#allocation7 + $0xc0] sm:$0xff]  ;;  %v160_v39 = vld [vmem:[#allocation7 + $0xf8] sm:$0xff]  ;;  %v154_v40 = vld [vmem:[#allocation7 + $0xc8] sm:$0xff] }
  0x25   :  { %247 = vmatpush.msra.mxu3 %v171_v25  ;;  %208 = vmatpush.msra.mxu1 %v165_v26  ;;  %v155_v41 = vld [vmem:[#allocation7 + $0xd0] sm:$0xff]  ;;  %v149_v42 = vld [vmem:[#allocation7 + $0xa0] sm:$0xff]  ;;  %v156_v43 = vld [vmem:[#allocation7 + $0xd8] sm:$0xff] }
  0x26   :  { %267 = vmatpush.msrb.mxu0 %v172_v27  ;;  %228 = vmatpush.msra.mxu2 %v166_v28  ;;  %v150_v44 = vld [vmem:[#allocation7 + $0xa8] sm:$0xff]  ;;  %v151_v45 = vld [vmem:[#allocation7 + $0xb0] sm:$0xff]  ;;  %v145_v46 = vld [vmem:[#allocation7 + $0x80] sm:$0xff] }
  0x27   :  { %248 = vmatpush.msra.mxu3 %v167_v29  ;;  %209 = vmatpush.msra.mxu1 %v161_v30  ;;  %v152_v47 = vld [vmem:[#allocation7 + $0xb8] sm:$0xff]  ;;  %v146_v48 = vld [vmem:[#allocation7 + $0x88] sm:$0xff]  ;;  %v147_v49 = vld [vmem:[#allocation7 + $0x90] sm:$0xff] }
  0x28   :  { %268 = vmatpush.msrb.mxu0 %v168_v31  ;;  %229 = vmatpush.msra.mxu2 %v162_v32  ;;  %v141_v50 = vld [vmem:[#allocation7 + $0x60] sm:$0xff]  ;;  %v148_v51 = vld [vmem:[#allocation7 + $0x98] sm:$0xff]  ;;  %v142_v52 = vld [vmem:[#allocation7 + $0x68] sm:$0xff] }
  0x29   :  { %249 = vmatpush.msra.mxu3 %v163_v33  ;;  %210 = vmatpush.msra.mxu1 %v157_v34  ;;  %v143_v53 = vld [vmem:[#allocation7 + $0x70] sm:$0xff]  ;;  %v144_v54 = vld [vmem:[#allocation7 + $0x78] sm:$0xff]  ;;  %v137_v55 = vld [vmem:[#allocation7 + $0x40] sm:$0xff] }
  0x2a   :  { %269 = vmatpush.msrb.mxu0 %v164_v35  ;;  %230 = vmatpush.msra.mxu2 %v158_v36  ;;  %v138_v56 = vld [vmem:[#allocation7 + $0x48] sm:$0xff]  ;;  %v139_v57 = vld [vmem:[#allocation7 + $0x50] sm:$0xff]  ;;  %v140_v58 = vld [vmem:[#allocation7 + $0x58] sm:$0xff] }
  0x2b   :  { %250 = vmatpush.msra.mxu3 %v159_v37  ;;  %211 = vmatpush.msra.mxu1 %v153_v38  ;;  %v133_v59 = vld [vmem:[#allocation7 + $0x20] sm:$0xff]  ;;  %v134_v60 = vld [vmem:[#allocation7 + $0x28] sm:$0xff]  ;;  %v135_v61 = vld [vmem:[#allocation7 + $0x30] sm:$0xff] }
  0x2c   :  { %270 = vmatpush.msrb.mxu0 %v160_v39  ;;  %231 = vmatpush.msra.mxu2 %v154_v40  ;;  %v136_v62 = vld [vmem:[#allocation7 + $0x38] sm:$0xff]  ;;  %v129_v63 = vld [vmem:[#allocation7] sm:$0xff]  ;;  %v130_v0 = vld [vmem:[#allocation7 + $0x8] sm:$0xff] }
  0x2d   :  { %251 = vmatpush.msra.mxu3 %v155_v41  ;;  %212 = vmatpush.msra.mxu1 %v149_v42  ;;  %v131_v1 = vld [vmem:[#allocation7 + $0x10] sm:$0xff]  ;;  %v132_v2 = vld [vmem:[#allocation7 + $0x18] sm:$0xff]  ;;  %v399_v3 = vld [vmem:[#allocation10] ss:$0 sm:$0xff] }
  0x2e   :  { %271 = vmatpush.msrb.mxu0 %v156_v43  ;;  %232 = vmatpush.msra.mxu2 %v150_v44  ;;  %v342_v7 = vld [vmem:[#allocation8 + $0x78] sm:$0xff]  ;;  %v341_v8 = vld [vmem:[#allocation8 + $0x70] sm:$0xff]  ;;  %v340_v9 = vld [vmem:[#allocation8 + $0x68] sm:$0xff] }
  0x2f   :  { %252 = vmatpush.msra.mxu3 %v151_v45  ;;  %213 = vmatpush.msra.mxu1 %v145_v46  ;;  %v339_v10 = vld [vmem:[#allocation8 + $0x60] sm:$0xff]  ;;  %v338_v11 = vld [vmem:[#allocation8 + $0x58] sm:$0xff]  ;;  %v337_v12 = vld [vmem:[#allocation8 + $0x50] sm:$0xff] }
  0x30   :  { %272 = vmatpush.msrb.mxu0 %v152_v47  ;;  %233 = vmatpush.msra.mxu2 %v146_v48  ;;  %v96_v13 = vld [vmem:[#allocation10 + $0x1] sm:$0xf]  ;;  %v336_v14 = vld [vmem:[#allocation8 + $0x48] sm:$0xff]  ;;  %v334_v17 = vld [vmem:[#allocation8 + $0x38] sm:$0xff] }
  0x31   :  { %253 = vmatpush.msra.mxu3 %v147_v49  ;;  %214 = vmatpush.msra.mxu1 %v141_v50  ;;  %v194_v15 = vperm.slane %v96_v13, 0  ;;  %v335_v16 = vld [vmem:[#allocation8 + $0x40] sm:$0xff]  ;;  %v333_v20 = vld [vmem:[#allocation8 + $0x30] sm:$0xff]  ;;  %v195_v22 = vperm.slane %v96_v13, 1  ;;  %v332_v23 = vld [vmem:[#allocation8 + $0x28] sm:$0xff]  ;;  %v197_v40 = vperm.slane %v96_v13, 3 }
  0x32   :  { %273 = vmatpush.msrb.mxu0 %v148_v51  ;;  %234 = vmatpush.msra.mxu2 %v142_v52  ;;  %v331_v24 = vld [vmem:[#allocation8 + $0x20] sm:$0xff]  ;;  %v330_v25 = vld [vmem:[#allocation8 + $0x18] sm:$0xff]  ;;  %v329_v28 = vld [vmem:[#allocation8 + $0x10] sm:$0xff]  ;;  %v196_v45 = vperm.slane %v96_v13, 2 }
  0x33   :  { %254 = vmatpush.msra.mxu3 %v143_v53  ;;  %215 = vmatpush.msra.mxu1 %v137_v55  ;;  %v328_v30 = vld [vmem:[#allocation8 + $0x8] sm:$0xff]  ;;  %v327_v32 = vld [vmem:[#allocation8] sm:$0xff] }
  0x34   :  { %274 = vmatpush.msrb.mxu0 %v144_v54  ;;  %235 = vmatpush.msra.mxu2 %v138_v56 }
  0x35   :  { %255 = vmatpush.msra.mxu3 %v139_v57  ;;  %216 = vmatpush.msra.mxu1 %v133_v59 }
  0x36   :  { %275 = vmatpush.msrb.mxu0 %v140_v58  ;;  %236 = vmatpush.msra.mxu2 %v134_v60 }
  0x37   :  { %256 = vmatpush.msra.mxu3 %v135_v61  ;;  %217 = vmatpush.msra.mxu1 %v129_v63 }
  0x38   :  { %276 = vmatpush.msrb.mxu0 %v136_v62  ;;  %237 = vmatpush.msra.mxu2 %v130_v0 }
  0x39   :  { %257 = vmatpush.msra.mxu3 %v131_v1  ;;  %346 = vmatpush.msrb.mxu1 %v342_v7 }
  0x3a   :  { %277 = vmatpush.msrb.mxu0 %v132_v2 }
  0x3b   :  { %347 = vmatpush.msrb.mxu1 %v341_v8 }
  0x3d   :  { %348 = vmatpush.msrb.mxu1 %v340_v9 }
  0x3f   :  { %349 = vmatpush.msrb.mxu1 %v339_v10 }
  0x41   :  { %350 = vmatpush.msrb.mxu1 %v338_v11 }
  0x43   :  { %351 = vmatpush.msrb.mxu1 %v337_v12 }
  0x45   :  { %352 = vmatpush.msrb.mxu1 %v336_v14 }
  0x47   :  { %353 = vmatpush.msrb.mxu1 %v335_v16 }
  0x49   :  { %354 = vmatpush.msrb.mxu1 %v334_v17 }
  0x4b   :  { %355 = vmatpush.msrb.mxu1 %v333_v20 }
  0x4d   :  { %356 = vmatpush.msrb.mxu1 %v332_v23 }
  0x4f   :  { %357 = vmatpush.msrb.mxu1 %v331_v24 }
  0x51   :  { %358 = vmatpush.msrb.mxu1 %v330_v25 }
  0x53   :  { %359 = vmatpush.msrb.mxu1 %v329_v28 }
  0x55   :  { %360 = vmatpush.msrb.mxu1 %v328_v30 }
  0x57   :  { %361 = vmatpush.msrb.mxu1 %v327_v32 }
  0x98   :  { %v125_v4 = vpop.f32.mrf.mxu0 }
  0x99   :  { %v126_v5 = vadd.f32 %v399_v3, %v125_v4 }
  0x9b   :  { %v618_v6 = vmax.f32 %v126_v5, 0.0  ;;  %v400_v5 = vld [vmem:[#allocation10 + $0x5] ss:$0 sm:$0xff] }
  0x9d   :  { %218 = vmatmul.f32.vlgmr.msra.gmra.mxu1 %v618_v6  ;;  %238 = vmatmul.f32.vlgmr.msra.gmra.mxu2 %v618_v6 }
  0x9e   :  { %258 = vmatmul.f32.vlgmr.msra.gmra.mxu3 %v618_v6  ;;  %278 = vmatmul.f32.vlgmr.msrb.gmra.mxu0 %v618_v6 }
 0x11a   :  { %v219_v18 = vpop.f32.mrf.mxu1 }
 0x11b   :  { %v220_v19 = vadd.f32 %v219_v18, %v194_v15  ;;  %v279_v44 = vpop.f32.mrf.mxu0 }
 0x11c   :  { %v280_v50 = vadd.f32 %v279_v44, %v197_v40 }
 0x11d   :  { %v387_v21 = vmul.f32 -1.442695, %v220_v19 }
 0x11f   :  { %401 = vpow2.f32 %v387_v21 }
 0x120   :  { %v239_v26 = vpop.f32.mrf.mxu2 }
 0x121   :  { %v240_v27 = vadd.f32 %v239_v26, %v195_v22  ;;  %v259_v48 = vpop.f32.mrf.mxu3 }
 0x122   :  { %v260_v54 = vadd.f32 %v259_v48, %v196_v45 }
 0x123   :  { %v388_v29 = vmul.f32 -1.442695, %v240_v27 }
 0x125   :  { %v402_v31 = vpop.eup %401  ;;  %403 = vpow2.f32 %v388_v29 }
 0x126   :  { %v285_v33 = vadd.f32 1.0, %v402_v31 }
 0x128   :  { %405 = vrcp.f32 %v285_v33  ;;  %v297_v39 = vand.u32 2147483648, %v285_v33  ;;  %v295_v42 = vand.u32 2147483647, %v285_v33  ;;  %vm291_vm2 = vweird.f32 %v285_v33 }
 0x12a   :  { %v298_v49 = vor.u32 1.1754944e-38, %v297_v39  ;;  %vm296_vm4 = vcmp.eq.f32.partialorder %v295_v42, 8.507059e+37 }
 0x12b   :  { %v404_v34 = vpop.eup %403 }
 0x12c   :  { %v304_v35 = vadd.f32 1.0, %v404_v34 }
 0x12e   :  { %v406_v36 = vpop.eup %405  ;;  %407 = vrcp.f32 %v304_v35  ;;  %v316_v57 = vand.u32 2147483648, %v304_v35  ;;  %v314_v58 = vand.u32 2147483647, %v304_v35  ;;  %vm310_vm6 = vweird.f32 %v304_v35 }
 0x12f   :  { %v287_v37 = vmul.f32 %v406_v36, %v285_v33  ;;  %vm292_vm1 = vweird.f32 %v406_v36 }
 0x130   :  { %vm293_vm3 = vmor %vm291_vm2, %vm292_vm1  ;;  %v317_v62 = vor.u32 1.1754944e-38, %v316_v57  ;;  %vm315_vm8 = vcmp.eq.f32.partialorder %v314_v58, 8.507059e+37 }
 0x131   :  { %v288_v38 = vsub.f32 1.0, %v287_v37 }
 0x133   :  { %v289_v41 = vmul.f32 %v406_v36, %v288_v38 }
 0x134   :  { %v408_v43 = vpop.eup %407 }
 0x135   :  { %v290_v46 = vadd.f32 %v406_v36, %v289_v41  ;;  %v306_v47 = vmul.f32 %v408_v43, %v304_v35  ;;  %vm311_vm5 = vweird.f32 %v408_v43 }
 0x136   :  { %vm312_vm7 = vmor %vm310_vm6, %vm311_vm5 }
 0x137   :  { %v294_v51 = vsel %vm293_vm3, %v406_v36, %v290_v46  ;;  %v307_v52 = vsub.f32 1.0, %v306_v47 }
 0x138   :  { %v299_v53 = vsel %vm296_vm4, %v298_v49, %v294_v51 }
 0x139   :  { %v320_v55 = vmul.f32 %v299_v53, %v280_v50  ;;  %v308_v56 = vmul.f32 %v408_v43, %v307_v52 }
 0x13b   :  { %v321_v59 = vadd.f32 %v320_v55, %v260_v54  ;;  %v309_v60 = vadd.f32 %v408_v43, %v308_v56 }
 0x13d   :  { %409 = vtanh.f32 %v321_v59  ;;  %v313_v61 = vsel %vm312_vm7, %v408_v43, %v309_v60 }
 0x13e   :  { %v318_v63 = vsel %vm315_vm8, %v317_v62, %v313_v61 }
 0x13f   :  { %v323_v0 = vsub.f32 1.0, %v318_v63  ;;  %v325_v3 = vmul.f32 %v318_v63, %v618_v6 }
 0x143   :  { %v410_v1 = vpop.eup %409 }
 0x144   :  { %v324_v2 = vmul.f32 %v410_v1, %v323_v0 }
 0x146   :  { %v326_v4 = vadd.f32 %v325_v3, %v324_v2 }
 0x148   :  { %362 = vmatmul.f32.vlgmr.msrb.gmra.mxu1 %v326_v4 }
 0x1c5   :  { %v363_v7 = vpop.f32.mrf.mxu1 }
 0x1c6   :  { %v364_v8 = vadd.f32 %v400_v5, %v363_v7 }
 0x1c8   :  { %366 = vst [vmem:[#allocation11] sm:$0xff] %v364_v8 }
 0x1c9   :  { %377 = dma.vmem_to_hbm [thread:$0]  %s373_s4, 128, %s375_s21, [#allocation4]  }
 0x1ca   :  { %561 = dma.done.wait [#allocation4], 128  }
 0x1cb   :  { %562 = vsyncadd [#allocation4], 4294967168 }
 0x1cc   :  { %382 = vsyncpa [#allocation3], 1 }
 0x1cd   :  { %383 = vsyncpa [#allocation6], 1 }
 0x1ce   :  { %384 = vsyncpa [#allocation9], 1 }
 0x1cf   :  { %385 = vsyncpa [#allocation4], 1 }

</bundles_post_ra>
